<compile_context>
chip_gen: v7x
topology: tpu7x:2x2x1
jax: 0.10.0
libtpu: 0.0.40
codegen_flags: <defaults>
</compile_context>

<pallas_src>
import jax
import jax.numpy as jnp
from jax.experimental import pallas as pl
from jax.experimental.pallas import tpu as pltpu


def _round_up(x, m):
    return (x + m - 1) // m * m


def asvd_kernel(x_ref, bt_ref, at_ref, bias_ref, o_ref, z_ref):
    # x_ref   : (tm, K)        activations tile
    # bt_ref  : (K, Rp)        B^T (pre-transposed, rank padded to 128)
    # at_ref  : (Rp, tn)       A^T tile (pre-transposed, padded)
    # bias_ref: (1, tn)        fp32 bias tile
    # o_ref   : (tm, tn)       output tile
    # z_ref   : (tm, Rp)       VMEM scratch holding x @ B^T for the current M tile

    # Compute the low-rank intermediate once per M tile and reuse it across all
    # out_features tiles (j axis). fp32 MXU accumulation; stored in the weight
    # (compute) dtype — exact for fp32 weights, autocast-like chaining for bf16.
    @pl.when(pl.program_id(1) == 0)
    def _():
        z_ref[...] = jnp.dot(
            x_ref[...], bt_ref[...], preferred_element_type=jnp.float32
        ).astype(z_ref.dtype)

    y = jnp.dot(z_ref[...], at_ref[...], preferred_element_type=jnp.float32)
    # Bias add stays in fp32 on the VPU (v5e has no bf16 VPU path).
    o_ref[...] = (y + bias_ref[...]).astype(o_ref.dtype)


def _select_tiles(M, K, Rp, Np, x_bytes, w_bytes, out_bytes,
                  budget_bytes=40 * 2**20, max_tm=1024, max_tn=None):
    """Pick (tm, tn) so double-buffered tiles + resident weights fit the budget."""

    def vmem_need(tm, tn):
        return (2 * tm * K * x_bytes          # x tile, double-buffered
                + 2 * tm * tn * out_bytes     # out tile, double-buffered
                + 2 * K * Rp * w_bytes        # B^T (constant block; 2nd buffer idle)
                + 2 * Rp * tn * w_bytes       # A^T tile
                + 2 * tn * 4                  # bias tile (fp32)
                + tm * Rp * w_bytes)          # z scratch

    tm_cap = _round_up(max(min(M, max_tm), 8), 8)
    tm_cands = sorted({c for c in (1024, 512, 256, 128, 64, 32, 16, 8, tm_cap)
                       if c <= tm_cap}, reverse=True)
    tn_cap = Np if max_tn is None else min(Np, _round_up(max_tn, 128))
    tn_cands = sorted({c for c in (Np, 4096, 2048, 1024, 512, 256, 128)
                       if c <= tn_cap and Np % c == 0}, reverse=True)

    for tm in tm_cands:          # prefer large tm: A^T is re-read once per M tile
        for tn in tn_cands:      # then the widest lane-dense out tile that fits
            if vmem_need(tm, tn) <= budget_bytes:
                return tm, tn, vmem_need(tm, tn)
    tm, tn = tm_cands[-1], tn_cands[-1]
    return tm, tn, vmem_need(tm, tn)


def asvd_linear(x, b_weight, a_weight, a_bias=None, *,
                param_dtype=None, max_tile_m=1024, max_tile_n=None):
    """ASVDLinear forward.  x: (..., in_features) -> (..., out_features).

    b_weight: (rank, in_features)   -- BLinear.weight (PyTorch layout)
    a_weight: (out_features, rank)  -- ALinear.weight
    a_bias  : (out_features,) or None
    param_dtype: optionally cast the weights (e.g. jnp.bfloat16) for the MXU fast path.
    """
    in_features = x.shape[-1]
    rank = b_weight.shape[0]
    out_features = a_weight.shape[0]
    assert b_weight.shape == (rank, in_features)
    assert a_weight.shape == (out_features, rank)

    if param_dtype is not None:
        b_weight = b_weight.astype(param_dtype)
        a_weight = a_weight.astype(param_dtype)
    w_dtype = a_weight.dtype

    lead = x.shape[:-1]
    x2 = x.reshape(-1, in_features)
    M = x2.shape[0]
    out_dtype = x.dtype

    # Lane-dense padding: rank and out_features rounded up to multiples of 128.
    K = in_features                      # full-dim block on the contraction axis
    Rp = _round_up(rank, 128)
    Np = _round_up(out_features, 128)

    x_bytes = x2.dtype.itemsize
    w_bytes = jnp.dtype(w_dtype).itemsize
    out_bytes = jnp.dtype(out_dtype).itemsize

    tm, tn, vmem_need = _select_tiles(M, K, Rp, Np, x_bytes, w_bytes, out_bytes,
                                      max_tm=max_tile_m, max_tn=max_tile_n)
    Mp = _round_up(M, tm)

    # Pre-transpose + pad parameters once per call (in a real model, cache these).
    b_t = jnp.zeros((K, Rp), w_dtype).at[:, :rank].set(b_weight.T)
    a_t = jnp.zeros((Rp, Np), w_dtype).at[:rank, :out_features].set(a_weight.T)
    bias2 = jnp.zeros((1, Np), jnp.float32)
    if a_bias is not None:
        bias2 = bias2.at[0, :out_features].set(a_bias.astype(jnp.float32))

    if Mp != M:
        x2 = jnp.pad(x2, ((0, Mp - M), (0, 0)))

    grid = (Mp // tm, Np // tn)

    flops = 2 * M * (in_features * rank + rank * out_features)
    bytes_accessed = int(Mp * K * x_bytes + b_t.size * w_bytes + a_t.size * w_bytes
                         + bias2.size * 4 + Mp * Np * out_bytes)
    vmem_limit = int(min(100 * 2**20, max(32 * 2**20, vmem_need * 5 // 4 + (2 << 20))))

    out = pl.pallas_call(
        asvd_kernel,
        out_shape=jax.ShapeDtypeStruct((Mp, Np), out_dtype),
        grid_spec=pltpu.PrefetchScalarGridSpec(
            num_scalar_prefetch=0,
            grid=grid,
            in_specs=[
                pl.BlockSpec((tm, K), lambda i, j: (i, 0)),    # x rows (fetched once per i)
                pl.BlockSpec((K, Rp), lambda i, j: (0, 0)),    # B^T resident
                pl.BlockSpec((Rp, tn), lambda i, j: (0, j)),   # A^T column tile
                pl.BlockSpec((1, tn), lambda i, j: (0, j)),    # bias tile
            ],
            out_specs=pl.BlockSpec((tm, tn), lambda i, j: (i, j)),
            scratch_shapes=[pltpu.VMEM((tm, Rp), w_dtype)],    # z = x @ B^T cache
        ),
        compiler_params=pltpu.CompilerParams(
            dimension_semantics=("parallel", "arbitrary"),
            vmem_limit_bytes=vmem_limit,
        ),
        cost_estimate=pl.CostEstimate(
            flops=flops, transcendentals=0, bytes_accessed=bytes_accessed),
    )(x2, b_t, a_t, bias2)

    return out[:M, :out_features].reshape(*lead, out_features)


if __name__ == "__main__":
    # Small shapes consistent with the module's forward:
    # input (batch, seq, in_features) -> output (batch, seq, out_features).
    batch, seq = 2, 8
    in_features, out_features, rank = 32, 32, 8

    key = jax.random.PRNGKey(0)
    keys = jax.random.split(key, 8)

    x = jax.random.normal(keys[0], (batch, seq, in_features), dtype=jnp.float32)
    b_weight = jax.random.normal(keys[1], (rank, in_features), dtype=jnp.float32) * 0.1
    a_weight = jax.random.normal(keys[2], (out_features, rank), dtype=jnp.float32) * 0.1
    a_bias = jax.random.normal(keys[3], (out_features,), dtype=jnp.float32) * 0.1

    # fp32 path.
    out = asvd_linear(x, b_weight, a_weight, a_bias)
    out = jax.block_until_ready(out)

    ref = jnp.einsum("bsi,ri->bsr", x, b_weight)
    ref = jnp.einsum("bsr,or->bso", ref, a_weight) + a_bias
    assert out.shape == (batch, seq, out_features)
    assert jnp.allclose(out, ref, atol=1e-3, rtol=1e-3)

    # bf16 weights + activations (MXU fast path, fp32 accumulation) — looser tolerance.
    out_bf16 = asvd_linear(x.astype(jnp.bfloat16), b_weight, a_weight, a_bias,
                           param_dtype=jnp.bfloat16)
    out_bf16 = jax.block_until_ready(out_bf16)
    assert jnp.allclose(out_bf16.astype(jnp.float32), ref, atol=5e-2, rtol=5e-2)

    # Ragged M (batch*seq not tile-aligned) + multi-tile out_features (forces the
    # pl.when / z-scratch reuse path with grid_n > 1) to exercise padding logic.
    b2, s2, in2, out2, r2 = 3, 5, 48, 256, 16
    x_b = jax.random.normal(keys[4], (b2, s2, in2), dtype=jnp.float32)
    bw_b = jax.random.normal(keys[5], (r2, in2), dtype=jnp.float32) * 0.1
    aw_b = jax.random.normal(keys[6], (out2, r2), dtype=jnp.float32) * 0.1
    ab_b = jax.random.normal(keys[7], (out2,), dtype=jnp.float32) * 0.1
    out_b = asvd_linear(x_b, bw_b, aw_b, ab_b, max_tile_n=128)
    out_b = jax.block_until_ready(out_b)
    ref_b = jnp.einsum("bsr,or->bso", jnp.einsum("bsi,ri->bsr", x_b, bw_b), aw_b) + ab_b
    assert out_b.shape == (b2, s2, out2)
    assert jnp.allclose(out_b, ref_b, atol=1e-3, rtol=1e-3)

    print("KERNEL_OK")
</pallas_src>

<mosaic_0001>
module attributes {stable_mosaic.version = 11 : i64} {
  func.func @asvd_kernel(%arg0: i32, %arg1: i32, %arg2: memref<16x32xf32, #tpu.memory_space<vmem>>, %arg3: memref<32x128xf32, #tpu.memory_space<vmem>>, %arg4: memref<128x128xf32, #tpu.memory_space<vmem>>, %arg5: memref<1x128xf32, #tpu.memory_space<vmem>>, %arg6: memref<16x128xf32, #tpu.memory_space<vmem>>, %arg7: memref<16x128xf32, #tpu.memory_space<vmem>>) attributes {dimension_semantics = [#tpu.dimension_semantics<parallel>, #tpu.dimension_semantics<arbitrary>], iteration_bounds = array<i64: 1, 1>, scalar_prefetch = 0 : i64, scratch_operands = 1 : i64, tpu.core_type = #tpu.core_type<tc>, window_params = [{transform_indices = @transform_0, window_bounds = array<i64: 16, 32>}, {pipeline_mode = #tpu.pipeline_mode<synchronous>, transform_indices = @transform_1, window_bounds = array<i64: 32, 128>}, {transform_indices = @transform_2, window_bounds = array<i64: 128, 128>}, {transform_indices = @transform_3, window_bounds = array<i64: 1, 128>}, {transform_indices = @transform_4, window_bounds = array<i64: 16, 128>}]} {
    %c0_i32 = arith.constant 0 : i32
    %0 = arith.cmpi eq, %arg1, %c0_i32 : i32
    %1 = arith.extui %0 : i1 to i32
    %c0_i32_0 = arith.constant 0 : i32
    %2 = arith.cmpi ne, %1, %c0_i32_0 : i32
    scf.if %2 {
      %c0_8 = arith.constant 0 : index
      %c0_9 = arith.constant 0 : index
      %10 = vector.load %arg2[%c0_8, %c0_9] : memref<16x32xf32, #tpu.memory_space<vmem>>, vector<16x32xf32>
      %c0_10 = arith.constant 0 : index
      %c0_11 = arith.constant 0 : index
      %11 = vector.load %arg3[%c0_10, %c0_11] : memref<32x128xf32, #tpu.memory_space<vmem>>, vector<32x128xf32>
      %cst_12 = arith.constant dense<0.000000e+00> : vector<16x128xf32>
      %12 = tpu.matmul %10, %11, %cst_12 {dimension_numbers = #tpu.dot_dimension_numbers<[1], [0], [0], [1], [0, 0, 1, 1], [], []>} : vector<16x32xf32>, vector<32x128xf32>, vector<16x128xf32> -> vector<16x128xf32>
      %c0_13 = arith.constant 0 : index
      %c0_14 = arith.constant 0 : index
      %13 = vector.load %arg7[%c0_13, %c0_14] : memref<16x128xf32, #tpu.memory_space<vmem>>, vector<16x128xf32>
      tpu.vector_store %arg7[%c0_13, %c0_14], %12 {strides = array<i32>} : memref<16x128xf32, #tpu.memory_space<vmem>>, vector<16x128xf32>,
    } else {
    }
    %c0 = arith.constant 0 : index
    %c0_1 = arith.constant 0 : index
    %3 = vector.load %arg7[%c0, %c0_1] : memref<16x128xf32, #tpu.memory_space<vmem>>, vector<16x128xf32>
    %c0_2 = arith.constant 0 : index
    %c0_3 = arith.constant 0 : index
    %4 = vector.load %arg4[%c0_2, %c0_3] : memref<128x128xf32, #tpu.memory_space<vmem>>, vector<128x128xf32>
    %cst = arith.constant dense<0.000000e+00> : vector<16x128xf32>
    %5 = tpu.matmul %3, %4, %cst {dimension_numbers = #tpu.dot_dimension_numbers<[1], [0], [0], [1], [0, 0, 1, 1], [], []>} : vector<16x128xf32>, vector<128x128xf32>, vector<16x128xf32> -> vector<16x128xf32>
    %c0_4 = arith.constant 0 : index
    %c0_5 = arith.constant 0 : index
    %6 = vector.load %arg5[%c0_4, %c0_5] : memref<1x128xf32, #tpu.memory_space<vmem>>, vector<1x128xf32>
    %7 = vector.broadcast %6 : vector<1x128xf32> to vector<16x128xf32>
    %8 = arith.addf %5, %7 : vector<16x128xf32>
    %c0_6 = arith.constant 0 : index
    %c0_7 = arith.constant 0 : index
    %9 = vector.load %arg6[%c0_6, %c0_7] : memref<16x128xf32, #tpu.memory_space<vmem>>, vector<16x128xf32>
    tpu.vector_store %arg6[%c0_6, %c0_7], %8 {strides = array<i32>} : memref<16x128xf32, #tpu.memory_space<vmem>>, vector<16x128xf32>,
    return
  }
  func.func @transform_0(%arg0: i32, %arg1: i32) -> (i32, i32) {
    %c0_i32 = arith.constant 0 : i32
    %c0_i32_0 = arith.constant 0 : i32
    return %arg0, %c0_i32 : i32, i32
  }
  func.func @transform_1(%arg0: i32, %arg1: i32) -> (i32, i32) {
    %c0_i32 = arith.constant 0 : i32
    %c0_i32_0 = arith.constant 0 : i32
    %c0_i32_1 = arith.constant 0 : i32
    return %c0_i32, %c0_i32_0 : i32, i32
  }
  func.func @transform_2(%arg0: i32, %arg1: i32) -> (i32, i32) {
    %c0_i32 = arith.constant 0 : i32
    %c0_i32_0 = arith.constant 0 : i32
    return %c0_i32, %arg1 : i32, i32
  }
  func.func @transform_3(%arg0: i32, %arg1: i32) -> (i32, i32) {
    %c0_i32 = arith.constant 0 : i32
    %c0_i32_0 = arith.constant 0 : i32
    return %c0_i32, %arg1 : i32, i32
  }
  func.func @transform_4(%arg0: i32, %arg1: i32) -> (i32, i32) {
    %c0_i32 = arith.constant 0 : i32
    return %arg0, %arg1 : i32, i32
  }
}

</mosaic_0001>

<bundles_post_ra>
// kernel: tpu_custom_call.1
= control target key start
LH: loop header
LB: loop body
LE: loop exit
PB: predicated region body
PF: predicated region fallthrough
CT: control target
= control target key end

     0   :  { %9 = vsyncpa [#allocation4], 0  ;;  %s589_s0 = inlined_call_operand.hbm [shape: f32[16,32], index: 0, kind: input, shape index: {}]   ;;  %s590_s1 = inlined_call_operand.hbm [shape: f32[32,128], index: 1, kind: input, shape index: {}]   ;;  %s591_s2 = inlined_call_operand.hbm [shape: f32[128,128], index: 2, kind: input, shape index: {}]   ;;  %s592_s3 = inlined_call_operand.vmem [shape: f32[1,128], index: 3, kind: input, shape index: {}]   ;;  %s593_s4 = inlined_call_operand.hbm [shape: f32[16,128], index: 4, kind: output, shape index: {}]  }
   0x1   :  { %10 = vsyncpa [#allocation7], 0 }
   0x2   :  { %11 = vsyncpa [#allocation5], 0  ;;  %s486_s15 = smov [#allocation6]   ;;  %s487_s17 = smov [#allocation3]  }
   0x3   :  { %s29_s16 = sshll.u32 %s486_s15, 4  ;;  %s17_s18 = sshll.u32 %s487_s17, 4  ;;  %s30_s16 = int_to_ptr.vmem [resolvable:$true] %s29_s16  ;;  %s517_s18 = int_to_ptr.vmem [resolvable:$true] %s17_s18 }
   0x4   :  { %s392_s21 = scalar_lea.hbm %s590_s1, 512 }
   0x5   :  { %p393_p0 = scmp.ne.s32.totalorder %s590_s1, %s392_s21  ;;  %p396_p1 = scmp.lt.u32.totalorder %s392_s21, %s590_s1 }
   0x7   :  { %p398_p2 = pnand %p396_p1, %p393_p0 }
   0x9   :  { %401 = shalt.err (!%p398_p2)
}
   0xa   :  { %s402_s26 = scalar_lea.vmem %s30_s16, 512  ;;  %p407_p4 = scmp.lt.s32.totalorder %s30_s16, %s30_s16 }
   0xb   :  { %p403_p3 = scmp.ne.s32.totalorder %s30_s16, %s402_s26  ;;  %p408_p5 = scmp.lt.s32.totalorder %s402_s26, %s402_s26 }
   0xd   :  { %p409_p6 = por %p408_p5, %p407_p4 }
   0xf   :  { %p410_p7 = pnand %p409_p6, %p403_p3 }
  0x11   :  { %413 = shalt.err (!%p410_p7)
}
  0x12   :  { %s488_s27 = smov 128   ;;  %s489_s28 = smov 8  }
  0x13   :  { %35 = dma.hbm_to_vmem [thread:$0]  %s590_s1, 512, %s30_s16, [#allocation7], %s488_s27, %s488_s27, %s489_s28  }
  0x14   :  { %s414_s7 = scalar_lea.hbm %s589_s0, 256 }
  0x15   :  { %p415_p8 = scmp.ne.s32.totalorder %s589_s0, %s414_s7  ;;  %p418_p9 = scmp.lt.u32.totalorder %s414_s7, %s589_s0 }
  0x17   :  { %p420_p10 = pnand %p418_p9, %p415_p8 }
  0x19   :  { %423 = shalt.err (!%p420_p10)
}
  0x1a   :  { %s424_s12 = scalar_lea.vmem %s517_s18, 256  ;;  %p429_p12 = scmp.lt.s32.totalorder %s517_s18, %s517_s18 }
  0x1b   :  { %p425_p11 = scmp.ne.s32.totalorder %s517_s18, %s424_s12  ;;  %p430_p13 = scmp.lt.s32.totalorder %s424_s12, %s424_s12 }
  0x1d   :  { %p431_p0 = por %p430_p13, %p429_p12 }
  0x1f   :  { %p432_p1 = pnand %p431_p0, %p425_p11 }
  0x21   :  { %435 = shalt.err (!%p432_p1)
}
  0x22   :  { %23 = dma.hbm_to_vmem [thread:$0]  %s589_s0, 256, %s517_s18, [#allocation4], %s488_s27, %s488_s27, %s489_s28  }
  0x23   :  { %s490_s14 = smov [#allocation8]   ;;  %s436_s19 = scalar_lea.hbm %s591_s2, 2048 }
  0x24   :  { %s41_s15 = sshll.u32 %s490_s14, 4  ;;  %p437_p2 = scmp.ne.s32.totalorder %s591_s2, %s436_s19  ;;  %s42_s15 = int_to_ptr.vmem [resolvable:$true] %s41_s15 }
  0x25   :  { %p440_p3 = scmp.lt.u32.totalorder %s436_s19, %s591_s2 }
  0x27   :  { %p442_p4 = pnand %p440_p3, %p437_p2 }
  0x29   :  { %445 = shalt.err (!%p442_p4)
}
  0x2a   :  { %s446_s24 = scalar_lea.vmem %s42_s15, 2048  ;;  %p451_p6 = scmp.lt.s32.totalorder %s42_s15, %s42_s15 }
  0x2b   :  { %p447_p5 = scmp.ne.s32.totalorder %s42_s15, %s446_s24  ;;  %p452_p7 = scmp.lt.s32.totalorder %s446_s24, %s446_s24 }
  0x2d   :  { %p453_p8 = por %p452_p7, %p451_p6 }
  0x2f   :  { %p454_p9 = pnand %p453_p8, %p447_p5 }
  0x31   :  { %457 = shalt.err (!%p454_p9)
}
  0x32   :  { %47 = dma.hbm_to_vmem [thread:$0]  %s591_s2, 2048, %s42_s15, [#allocation7], %s488_s27, %s488_s27, %s489_s28  }
  0x33   :  { %480 = dma.done.wait [#allocation4], 256  }
  0x34   :  { %481 = vsyncadd [#allocation4], 4294967040 }
  0x35   :  { %482 = dma.done.wait [#allocation7], 2560  }
  0x36   :  { %483 = vsyncadd [#allocation7], 4294964736  ;;  %vm69_vm0 = vcmask 261120   ;;  %v65_v0 = vld [vmem:[#allocation6] sm:$0xff]  ;;  %v66_v1 = vld [vmem:[#allocation6 + $0x8] sm:$0xff]  ;;  %s491_s26 = smov [#allocation9]  }
  0x37   :  { %v67_v2 = vld [vmem:[#allocation6 + $0x10] sm:$0xff]  ;;  %v346_v3 = vpack.c.bf16 %v66_v1, %v65_v0  ;;  %v68_v4 = vld [vmem:[#allocation6 + $0x18] sm:$0xff]  ;;  %v155_v7 = vld [vmem:[#allocation8] sm:$0xff]  ;;  %s260_s29 = sshll.u32 %s491_s26, 4  ;;  %s261_s29 = int_to_ptr.vmem [resolvable:$true] %s260_s29 }
  0x38   :  { %v63_v5 = vld [vmem:[#allocation3] sm:$0xff]  ;;  %v350_v6 = vpack.c.bf16 %v68_v4, %v67_v2  ;;  %v156_v8 = vld [vmem:[#allocation8 + $0x8] sm:$0xff]  ;;  %v158_v11 = vld [vmem:[#allocation8 + $0x18] sm:$0xff]  ;;  %s458_s30 = scalar_lea.vmem %s261_s29, 256  ;;  %p463_p11 = scmp.lt.s32.totalorder %s261_s29, %s261_s29 }
  0x39   :  { %308 = vmatprep.mubr.msk.f32.mxu0 %vm69_vm0, %v63_v5  ;;  %v157_v9 = vld [vmem:[#allocation8 + $0x10] sm:$0xff]  ;;  %347 = vmatprep.subr.bf16.mxu0 %v346_v3  ;;  %v354_v10 = vpack.c.bf16 %v156_v8, %v155_v7  ;;  %v159_v13 = vld [vmem:[#allocation8 + $0x20] sm:$0xff]  ;;  %v160_v14 = vld [vmem:[#allocation8 + $0x28] sm:$0xff]  ;;  %p459_p10 = scmp.ne.s32.totalorder %s261_s29, %s458_s30  ;;  %p464_p12 = scmp.lt.s32.totalorder %s458_s30, %s458_s30 }
  0x3a   :  { %349 = vmatpush3.bf16.msra.mxu0 %v346_v3  ;;  %v358_v12 = vpack.c.bf16 %v158_v11, %v157_v9  ;;  %v362_v15 = vpack.c.bf16 %v160_v14, %v159_v13  ;;  %v64_v16 = vld [vmem:[#allocation3 + $0x8] sm:$0xff]  ;;  %v161_v17 = vld [vmem:[#allocation8 + $0x30] sm:$0xff]  ;;  %v163_v20 = vld [vmem:[#allocation8 + $0x40] sm:$0xff] }
  0x3b   :  { %351 = vmatprep.subr.bf16.mxu0 %v350_v6  ;;  %355 = vmatprep.subr.bf16.mxu1 %v354_v10  ;;  %v162_v18 = vld [vmem:[#allocation8 + $0x38] sm:$0xff]  ;;  %v164_v21 = vld [vmem:[#allocation8 + $0x48] sm:$0xff]  ;;  %v165_v23 = vld [vmem:[#allocation8 + $0x50] sm:$0xff]  ;;  %p465_p13 = por %p464_p12, %p463_p11 }
  0x3c   :  { %357 = vmatpush3.bf16.msra.mxu1 %v354_v10  ;;  %v366_v19 = vpack.c.bf16 %v162_v18, %v161_v17  ;;  %v370_v22 = vpack.c.bf16 %v164_v21, %v163_v20  ;;  %v166_v24 = vld [vmem:[#allocation8 + $0x58] sm:$0xff]  ;;  %v167_v26 = vld [vmem:[#allocation8 + $0x60] sm:$0xff]  ;;  %v168_v27 = vld [vmem:[#allocation8 + $0x68] sm:$0xff] }
  0x3d   :  { %359 = vmatprep.subr.bf16.mxu1 %v358_v12  ;;  %v374_v25 = vpack.c.bf16 %v166_v24, %v165_v23  ;;  %v378_v28 = vpack.c.bf16 %v168_v27, %v167_v26  ;;  %v169_v29 = vld [vmem:[#allocation8 + $0x70] sm:$0xff]  ;;  %v170_v30 = vld [vmem:[#allocation8 + $0x78] sm:$0xff]  ;;  %p466_p0 = pnand %p465_p13, %p459_p10 }
  0x3e   :  { %353 = vmatpush3.bf16.msra.mxu0 %v350_v6  ;;  %v382_v31 = vpack.c.bf16 %v170_v30, %v169_v29  ;;  %v275_v34 = vld [vmem:[%s592_s3] ss:$0 sm:$0xff] }
  0x40   :  { %361 = vmatpush3.bf16.msra.mxu1 %v358_v12 }
  0x41   :  { %309 = vmatmul.mubr.msk.f32.vlgmr.msra.gmra.mrb[0].mxu0 %vm69_vm0, %v64_v16  ;;  %363 = vmatprep.subr.bf16.mxu1 %v362_v15 }
  0x44   :  { %365 = vmatpush3.bf16.msra.mxu1 %v362_v15 }
  0x45   :  { %367 = vmatprep.subr.bf16.mxu1 %v366_v19 }
  0x48   :  { %369 = vmatpush3.bf16.msra.mxu1 %v366_v19 }
  0x49   :  { %371 = vmatprep.subr.bf16.mxu1 %v370_v22 }
  0x4c   :  { %373 = vmatpush3.bf16.msra.mxu1 %v370_v22 }
  0x4d   :  { %375 = vmatprep.subr.bf16.mxu1 %v374_v25 }
  0x50   :  { %377 = vmatpush3.bf16.msra.mxu1 %v374_v25 }
  0x51   :  { %379 = vmatprep.subr.bf16.mxu1 %v378_v28 }
  0x54   :  { %381 = vmatpush3.bf16.msra.mxu1 %v378_v28 }
  0x55   :  { %383 = vmatprep.subr.bf16.mxu1 %v382_v31 }
  0x58   :  { %385 = vmatpush3.bf16.msra.mxu1 %v382_v31 }
 0x114   :  { %v310_v32 = vpop.f32.mrb[0].mxu0 }
 0x115   :  { %v142_v33 = vpop.f32.mrb[1].mxu0 }
 0x116   :  { %343 = vmatprep.mubr.f32.mxu1 %v142_v33 }
 0x117   :  { %344 = vmatmul.mubr.f32.vlgmr.msra.gmra.mrb[0].mxu1 %v310_v32 }
 0x1ea   :  { %v345_v35 = vpop.f32.mrb[0].mxu1 }
 0x1eb   :  { %v250_v36 = vadd.f32 %v345_v35, %v275_v34  ;;  %v244_v37 = vpop.f32.mrb[1].mxu1 }
 0x1ec   :  { %v245_v38 = vadd.f32 %v275_v34, %v244_v37 }
 0x1ed   :  { %254 = vst [vmem:[#allocation9 + $0x8] sm:$0xff] %v250_v36 }
 0x1ee   :  { %253 = vst [vmem:[#allocation9] sm:$0xff] %v245_v38 }
 0x1ef   :  { %469 = shalt.err (!%p466_p0)
}
 0x1f0   :  { %s470_s3 = scalar_lea.hbm %s593_s4, 256 }
 0x1f1   :  { %p471_p1 = scmp.ne.s32.totalorder %s593_s4, %s470_s3  ;;  %p474_p2 = scmp.lt.u32.totalorder %s470_s3, %s593_s4 }
 0x1f3   :  { %p476_p3 = pnand %p474_p2, %p471_p1 }
 0x1f5   :  { %479 = shalt.err (!%p476_p3)
}
 0x1f6   :  { %266 = dma.vmem_to_hbm [thread:$0]  %s261_s29, 256, %s593_s4, [#allocation5], %s488_s27, %s488_s27, %s489_s28  }
 0x1f7   :  { %484 = dma.done.wait [#allocation5], 256  }
 0x1f8   :  { %485 = vsyncadd [#allocation5], 4294967040 }
 0x1f9   :  { %270 = vsyncpa [#allocation4], 1 }
 0x1fa   :  { %271 = vsyncpa [#allocation7], 1 }
 0x1fb   :  { %272 = vsyncpa [#allocation5], 1 }

</bundles_post_ra>
